<compile_context>
chip_gen: v5e
topology: v5e:2x2
jax: 0.10.0
libtpu: 0.0.40
codegen_flags: <defaults>
</compile_context>

<pallas_src>
import math

import jax
import jax.numpy as jnp
import numpy as np
from jax.experimental import pallas as pl
from jax.experimental.pallas import tpu as pltpu

Pad_Mode = ['constant', 'reflect', 'replicate', 'circular']
_JNP_PAD = {'constant': 'constant', 'reflect': 'reflect',
            'replicate': 'edge', 'circular': 'wrap'}

_HAAR_S = 1.0 / math.sqrt(2.0)

_VMEM_BUDGET_BYTES = 8 * 1024 * 1024   # double-buffered working set (v5e-safe headroom)
_MAX_LANE_TILE = 1024                  # lane tile cap (multiple of 128)
_MIN_PROGRAMS = 8                      # keep both v7x TCs + the pipeline busy


# ----------------------------------------------------------------------- kernel bodies
def _pair_kernel(xe_ref, xo_ref, lo_ref, hi_ref):
    """Proven fallback: even/odd samples arrive pre-split as two lane-dense inputs."""
    xe = xe_ref[...]
    xo = xo_ref[...]
    # Haar taps baked in; compute in the input dtype (bf16 is native on v6e/v7x VPUs).
    lo_ref[...] = ((xe + xo) * _HAAR_S).astype(lo_ref.dtype)
    hi_ref[...] = ((xe - xo) * _HAAR_S).astype(hi_ref.dtype)


def _fused_kernel_strided_ref(x_ref, lo_ref, hi_ref):
    """Fused: interleaved (Rt, 2*Tc) block; lane-strided *ref* loads split even/odd."""
    t = lo_ref.shape[-1]
    xe = x_ref[:, pl.ds(0, t, 2)]
    xo = x_ref[:, pl.ds(1, t, 2)]
    lo_ref[...] = ((xe + xo) * _HAAR_S).astype(lo_ref.dtype)
    hi_ref[...] = ((xe - xo) * _HAAR_S).astype(hi_ref.dtype)


def _fused_kernel_strided_val(x_ref, lo_ref, hi_ref):
    """Fused: load the interleaved block, then split with a strided value slice."""
    x = x_ref[...]
    xe = x[:, 0::2]
    xo = x[:, 1::2]
    lo_ref[...] = ((xe + xo) * _HAAR_S).astype(lo_ref.dtype)
    hi_ref[...] = ((xe - xo) * _HAAR_S).astype(hi_ref.dtype)


_FUSED_CANDIDATES = (_fused_kernel_strided_ref, _fused_kernel_strided_val)
# TODO(synk): add a bitcast / pltpu.unpack_elementwise split for 16-bit inputs (an
# (even, odd) bf16 pair shares one 32-bit word) so bf16 avoids lane shuffles entirely.


# ------------------------------------------------------------------------------ tiling
def _sublane_multiple(itemsize):
    # 8 for f32, 16 for bf16/f16, 32 for int8/fp8 (sub-32-bit dtypes pack along sublanes).
    return 8 * max(1, 4 // itemsize)


def _pick_tiles(rows, cols, itemsize):
    """Lane-dense length tiles, VMEM-bounded row tiles, >=_MIN_PROGRAMS grid if possible."""
    sub = _sublane_multiple(itemsize)
    tile_c = cols if cols <= _MAX_LANE_TILE else _MAX_LANE_TILE
    # Per grid step the fused kernel moves 4*tile_r*tile_c elements (one 2*Tc input
    # block + two Tc output blocks); double-buffering doubles that footprint.
    max_rows = max(1, _VMEM_BUDGET_BYTES // (8 * itemsize * max(tile_c, 1)))
    if rows <= max_rows:
        tile_r = rows                          # full dim is always a legal block dim
    else:
        tile_r = max(sub, (max_rows // sub) * sub)

    def n_programs():
        return pl.cdiv(rows, tile_r) * pl.cdiv(cols, tile_c)

    # Ensure enough grid programs for v7x's two TensorCores (and for DMA/compute
    # pipelining in general) whenever the problem shape allows it.
    while n_programs() < _MIN_PROGRAMS:
        if tile_r > sub:
            tile_r = max(sub, (((tile_r + 1) // 2 + sub - 1) // sub) * sub)
        elif tile_c > 128:
            tile_c = max(128, ((tile_c // 2 + 127) // 128) * 128)
        else:
            break
    return tile_r, tile_c


# ------------------------------------------------------------------------ pallas calls
def _common_params(rows, cols, itemsize):
    n = rows * cols
    cost = pl.CostEstimate(flops=4 * n, transcendentals=0,
                           bytes_accessed=4 * n * itemsize)
    params = pltpu.CompilerParams(dimension_semantics=("parallel", "parallel"))
    return cost, params


def _fused_call(body, x_int, rows, cols, tile_r, tile_c):
    """x_int: (rows, 2*cols) interleaved samples -> (lo, hi) each (rows, cols)."""
    dtype = x_int.dtype
    itemsize = jnp.dtype(dtype).itemsize
    cost, params = _common_params(rows, cols, itemsize)
    grid = (pl.cdiv(rows, tile_r), pl.cdiv(cols, tile_c))
    in_spec = pl.BlockSpec((tile_r, 2 * tile_c), lambda r, c: (r, c))
    out_spec = pl.BlockSpec((tile_r, tile_c), lambda r, c: (r, c))
    return pl.pallas_call(
        body,
        out_shape=(jax.ShapeDtypeStruct((rows, cols), dtype),
                   jax.ShapeDtypeStruct((rows, cols), dtype)),
        grid=grid,
        in_specs=[in_spec],
        out_specs=(out_spec, out_spec),
        compiler_params=params,
        cost_estimate=cost,
    )(x_int)


def _pair_call(x_even, x_odd, rows, cols, tile_r, tile_c):
    """Fallback path: pre-split even/odd inputs, each (rows, cols)."""
    dtype = x_even.dtype
    itemsize = jnp.dtype(dtype).itemsize
    cost, params = _common_params(rows, cols, itemsize)
    grid = (pl.cdiv(rows, tile_r), pl.cdiv(cols, tile_c))
    spec = pl.BlockSpec((tile_r, tile_c), lambda r, c: (r, c))
    return pl.pallas_call(
        _pair_kernel,
        out_shape=(jax.ShapeDtypeStruct((rows, cols), dtype),
                   jax.ShapeDtypeStruct((rows, cols), dtype)),
        grid=grid,
        in_specs=[spec, spec],
        out_specs=(spec, spec),
        compiler_params=params,
        cost_estimate=cost,
    )(x_even, x_odd)


# --------------------------------------------------------------- fused-body selection
_fused_body = "unset"     # "unset" -> probe not run yet; None -> not supported
_fused_config_ok = {}     # (rows, cols, tile_r, tile_c, dtype) -> bool


def _probe_fused_body():
    """One-time probe: pick an in-kernel de-interleave variant that both compiles and is
    numerically correct on this Mosaic version; otherwise return None (use fallback)."""
    global _fused_body
    if _fused_body != "unset":
        return _fused_body
    _fused_body = None
    xe = np.arange(8 * 128, dtype=np.float32).reshape(8, 128)
    xo = xe + 0.5
    x_int = np.zeros((8, 256), dtype=np.float32)
    x_int[:, 0::2] = xe
    x_int[:, 1::2] = xo
    want_lo = (xe + xo) * _HAAR_S
    want_hi = (xe - xo) * _HAAR_S
    for body in _FUSED_CANDIDATES:
        try:
            lo, hi = _fused_call(body, jnp.asarray(x_int), 8, 128, 8, 128)
            lo = np.asarray(jax.block_until_ready(lo))
            hi = np.asarray(jax.block_until_ready(hi))
            if (np.allclose(lo, want_lo, atol=1e-5, rtol=1e-5)
                    and np.allclose(hi, want_hi, atol=1e-5, rtol=1e-5)):
                _fused_body = body
                break
        except Exception:        # lowering / compile failure -> try the next candidate
            continue
    return _fused_body


def _haar_dwt1d(x_int, rows, cols):
    """x_int: (rows, 2*cols) interleaved samples.  Returns (lo, hi), each (rows, cols)."""
    itemsize = jnp.dtype(x_int.dtype).itemsize
    tile_r, tile_c = _pick_tiles(rows, cols, itemsize)
    body = _probe_fused_body()
    if body is not None:
        key = (rows, cols, tile_r, tile_c, str(x_int.dtype))
        if _fused_config_ok.get(key, True):
            try:
                out = _fused_call(body, x_int, rows, cols, tile_r, tile_c)
                _fused_config_ok[key] = True
                return out
            except Exception:     # config-specific lowering failure -> proven fallback
                _fused_config_ok[key] = False
    # Fallback: even/odd de-interleave with one XLA pass, then the two-input kernel.
    xp = x_int.reshape(rows, cols, 2)
    return _pair_call(xp[:, :, 0], xp[:, :, 1], rows, cols, tile_r, tile_c)


# ----------------------------------------------------------------------------- module
class DWT_1D:
    """JAX/Pallas port of the PyTorch DWT_1D module (forward pass only)."""

    def __init__(self, pad_type='reflect', wavename='haar', stride=2,
                 in_channels=1, out_channels=None, groups=None,
                 kernel_size=None, trainable=False):
        self.trainable = trainable
        self.kernel_size = kernel_size
        if not self.trainable:
            assert self.kernel_size is None
        self.in_channels = in_channels
        self.out_channels = self.in_channels if out_channels is None else out_channels
        self.groups = self.in_channels if groups is None else groups
        assert isinstance(self.groups, int) and self.in_channels % self.groups == 0
        self.stride = stride
        assert self.stride == 2
        self.wavename = wavename
        self.pad_type = pad_type
        assert self.pad_type in Pad_Mode
        self._get_filters()
        self._initialization()

    def _get_filters(self):
        # TODO(synk): only 'haar' coefficients are built in-script (no pywt dependency);
        # other wavelet families would need their rec_lo / rec_hi tables.
        assert self.wavename == 'haar', "only 'haar' is supported in this synthetic port"
        s = 1.0 / math.sqrt(2.0)
        band_low = np.array([s, s], dtype=np.float32)      # pywt haar rec_lo
        band_high = np.array([s, -s], dtype=np.float32)    # pywt haar rec_hi
        length_band = band_low.shape[0]
        self.kernel_size = length_band if self.kernel_size is None else self.kernel_size
        assert self.kernel_size >= length_band
        a = (self.kernel_size - length_band) // 2
        b = -(self.kernel_size - length_band - a)
        b = None if b == 0 else b
        self.filt_low = np.zeros(self.kernel_size, dtype=np.float32)
        self.filt_high = np.zeros(self.kernel_size, dtype=np.float32)
        self.filt_low[a:b] = band_low
        self.filt_high[a:b] = band_high

    def _initialization(self):
        rep = (self.out_channels, self.in_channels // self.groups, 1)
        self.filter_low = jnp.asarray(np.tile(self.filt_low[None, None, :], rep))
        self.filter_high = jnp.asarray(np.tile(self.filt_high[None, None, :], rep))
        if self.kernel_size % 2 == 0:
            self.pad_sizes = [self.kernel_size // 2 - 1, self.kernel_size // 2 - 1]
        else:
            self.pad_sizes = [self.kernel_size // 2, self.kernel_size // 2]

    def __call__(self, x):
        assert x.ndim == 3                      # (B, C, L)  -- PyTorch NCL layout
        assert x.shape[1] == self.in_channels
        # The Pallas path implements the module's default depthwise configuration.
        assert self.groups == self.in_channels == self.out_channels, \
            "Pallas path implements the depthwise (default) configuration"
        # TODO(synk): general grouped conv1d (groups < in_channels) not implemented here.

        B, C, L = x.shape
        K = self.kernel_size
        pad_l, pad_r = self.pad_sizes

        # Padding (glue, plain JAX).  For haar: pad_sizes == [0, 0] -> skipped.
        if pad_l > 0 or pad_r > 0:
            x = jnp.pad(x, ((0, 0), (0, 0), (pad_l, pad_r)),
                        mode=_JNP_PAD[self.pad_type])
        Lp = L + pad_l + pad_r
        Lo = (Lp - K) // self.stride + 1

        # Only the two haar taps at offset a = (K-2)//2 of the (zero-padded) filter
        # contribute:  lo[n] = s*(x[2n+a] + x[2n+a+1]),  hi[n] = s*(x[2n+a] - x[2n+a+1]).
        # TODO(synk): a generic K-tap path for arbitrary learned filters is not implemented.
        a = (K - 2) // 2
        R = B * C

        # Interleaved (R, 2*Lo) slab.  For the common haar case (K == 2, even L) this is a
        # free metadata reshape; odd L / K > 2 needs one XLA slice pass to drop the tail.
        if a == 0 and 2 * Lo == Lp:
            x_int = x.reshape(R, 2 * Lo)
        else:
            x_int = jax.lax.slice_in_dim(x, a, a + 2 * Lo, axis=2).reshape(R, 2 * Lo)

        # Lane-dense re-tiling for short sequences: Lo < 128 would force masked partial
        # stores, so re-view the problem as (N/128, 128) rows when the size allows it
        # (free reshape -- even/odd pairs stay adjacent in the flat element order).
        rows, cols = R, Lo
        if Lo < 128 and (R * Lo) % 128 == 0:
            cols = 128
            rows = (R * Lo) // 128
        x_int = x_int.reshape(rows, 2 * cols)

        lo, hi = _haar_dwt1d(x_int, rows, cols)
        # Outputs are already in NCL element order: reshaping back is free.
        return lo.reshape(B, C, Lo), hi.reshape(B, C, Lo)


# -------------------------------------------------------------------------- reference
def _reference(x, filt_lo, filt_hi, stride=2):
    """Pure-JAX reference for the depthwise stride-2 conv (no padding needed for haar)."""
    B, C, Lp = x.shape
    K = filt_lo.shape[0]
    Lo = (Lp - K) // stride + 1
    idx = stride * jnp.arange(Lo)[:, None] + jnp.arange(K)[None, :]     # (Lo, K)
    patches = x[:, :, idx]                                              # (B, C, Lo, K)
    lo = jnp.einsum('bclk,k->bcl', patches, filt_lo)
    hi = jnp.einsum('bclk,k->bcl', patches, filt_hi)
    return lo, hi


if __name__ == "__main__":
    key = jax.random.PRNGKey(0)
    # Small deterministic cases: even L, odd L, and one that exercises the lane-dense
    # (N/128, 128) re-tiling path.
    for (B, C, L) in [(2, 4, 16), (2, 4, 17), (2, 8, 64)]:
        key, sub = jax.random.split(key)
        x = jax.random.normal(sub, (B, C, L), dtype=jnp.float32)

        dwt = DWT_1D(in_channels=C)
        lo, hi = dwt(x)
        lo, hi = jax.block_until_ready(lo), jax.block_until_ready(hi)

        ref_lo, ref_hi = _reference(x, jnp.asarray(dwt.filt_low), jnp.asarray(dwt.filt_high))
        Lo = (L - 2) // 2 + 1
        assert lo.shape == (B, C, Lo) and hi.shape == (B, C, Lo)
        assert np.allclose(np.asarray(lo), np.asarray(ref_lo), atol=1e-5, rtol=1e-5)
        assert np.allclose(np.asarray(hi), np.asarray(ref_hi), atol=1e-5, rtol=1e-5)

    print("KERNEL_OK")
</pallas_src>

<mosaic_0001>
module attributes {stable_mosaic.version = 11 : i64} {
  func.func @_fused_kernel_strided_ref(%arg0: i32, %arg1: i32, %arg2: memref<8x256xf32, #tpu.memory_space<vmem>>, %arg3: memref<8x128xf32, #tpu.memory_space<vmem>>, %arg4: memref<8x128xf32, #tpu.memory_space<vmem>>) attributes {dimension_semantics = [#tpu.dimension_semantics<parallel>, #tpu.dimension_semantics<parallel>], iteration_bounds = array<i64: 1, 1>, scalar_prefetch = 0 : i64, scratch_operands = 0 : i64, tpu.core_type = #tpu.core_type<tc>, window_params = [{transform_indices = @transform_0, window_bounds = array<i64: 8, 256>}, {transform_indices = @transform_1, window_bounds = array<i64: 8, 128>}, {transform_indices = @transform_2, window_bounds = array<i64: 8, 128>}]} {
    %c0 = arith.constant 0 : index
    %c0_0 = arith.constant 0 : index
    %0 = tpu.strided_load %arg2[%c0, %c0_0] {strides = array<i32: 1, 2>} : memref<8x256xf32, #tpu.memory_space<vmem>>, vector<8x128xf32>
    %c0_1 = arith.constant 0 : index
    %c1 = arith.constant 1 : index
    %1 = tpu.strided_load %arg2[%c0_1, %c1] {strides = array<i32: 1, 2>} : memref<8x256xf32, #tpu.memory_space<vmem>>, vector<8x128xf32>
    %2 = arith.addf %0, %1 : vector<8x128xf32>
    %cst = arith.constant 0.707106769 : f32
    %3 = vector.broadcast %cst : f32 to vector<8x128xf32>
    %4 = arith.mulf %2, %3 : vector<8x128xf32>
    %c0_2 = arith.constant 0 : index
    %c0_3 = arith.constant 0 : index
    %5 = vector.load %arg3[%c0_2, %c0_3] : memref<8x128xf32, #tpu.memory_space<vmem>>, vector<8x128xf32>
    tpu.vector_store %arg3[%c0_2, %c0_3], %4 {strides = array<i32>} : memref<8x128xf32, #tpu.memory_space<vmem>>, vector<8x128xf32>,
    %6 = arith.subf %0, %1 : vector<8x128xf32>
    %cst_4 = arith.constant 0.707106769 : f32
    %7 = vector.broadcast %cst_4 : f32 to vector<8x128xf32>
    %8 = arith.mulf %6, %7 : vector<8x128xf32>
    %c0_5 = arith.constant 0 : index
    %c0_6 = arith.constant 0 : index
    %9 = vector.load %arg4[%c0_5, %c0_6] : memref<8x128xf32, #tpu.memory_space<vmem>>, vector<8x128xf32>
    tpu.vector_store %arg4[%c0_5, %c0_6], %8 {strides = array<i32>} : memref<8x128xf32, #tpu.memory_space<vmem>>, vector<8x128xf32>,
    return
  }
  func.func @transform_0(%arg0: i32, %arg1: i32) -> (i32, i32) {
    %c0_i32 = arith.constant 0 : i32
    return %arg0, %arg1 : i32, i32
  }
  func.func @transform_1(%arg0: i32, %arg1: i32) -> (i32, i32) {
    %c0_i32 = arith.constant 0 : i32
    return %arg0, %arg1 : i32, i32
  }
  func.func @transform_2(%arg0: i32, %arg1: i32) -> (i32, i32) {
    %c0_i32 = arith.constant 0 : i32
    return %arg0, %arg1 : i32, i32
  }
}

module attributes {stable_mosaic.version = 11 : i64} {
  func.func @_pair_kernel(%arg0: i32, %arg1: i32, %arg2: memref<8x8xf32, #tpu.memory_space<vmem>>, %arg3: memref<8x8xf32, #tpu.memory_space<vmem>>, %arg4: memref<8x8xf32, #tpu.memory_space<vmem>>, %arg5: memref<8x8xf32, #tpu.memory_space<vmem>>) attributes {dimension_semantics = [#tpu.dimension_semantics<parallel>, #tpu.dimension_semantics<parallel>], iteration_bounds = array<i64: 1, 1>, scalar_prefetch = 0 : i64, scratch_operands = 0 : i64, tpu.core_type = #tpu.core_type<tc>, window_params = [{transform_indices = @transform_0, window_bounds = array<i64: 8, 8>}, {transform_indices = @transform_1, window_bounds = array<i64: 8, 8>}, {transform_indices = @transform_2, window_bounds = array<i64: 8, 8>}, {transform_indices = @transform_3, window_bounds = array<i64: 8, 8>}]} {
    %c0 = arith.constant 0 : index
    %c0_0 = arith.constant 0 : index
    %0 = vector.load %arg2[%c0, %c0_0] : memref<8x8xf32, #tpu.memory_space<vmem>>, vector<8x8xf32>
    %c0_1 = arith.constant 0 : index
    %c0_2 = arith.constant 0 : index
    %1 = vector.load %arg3[%c0_1, %c0_2] : memref<8x8xf32, #tpu.memory_space<vmem>>, vector<8x8xf32>
    %2 = arith.addf %0, %1 : vector<8x8xf32>
    %cst = arith.constant 0.707106769 : f32
    %3 = vector.broadcast %cst : f32 to vector<8x8xf32>
    %4 = arith.mulf %2, %3 : vector<8x8xf32>
    %c0_3 = arith.constant 0 : index
    %c0_4 = arith.constant 0 : index
    %5 = vector.load %arg4[%c0_3, %c0_4] : memref<8x8xf32, #tpu.memory_space<vmem>>, vector<8x8xf32>
    tpu.vector_store %arg4[%c0_3, %c0_4], %4 {strides = array<i32>} : memref<8x8xf32, #tpu.memory_space<vmem>>, vector<8x8xf32>,
    %6 = arith.subf %0, %1 : vector<8x8xf32>
    %cst_5 = arith.constant 0.707106769 : f32
    %7 = vector.broadcast %cst_5 : f32 to vector<8x8xf32>
    %8 = arith.mulf %6, %7 : vector<8x8xf32>
    %c0_6 = arith.constant 0 : index
    %c0_7 = arith.constant 0 : index
    %9 = vector.load %arg5[%c0_6, %c0_7] : memref<8x8xf32, #tpu.memory_space<vmem>>, vector<8x8xf32>
    tpu.vector_store %arg5[%c0_6, %c0_7], %8 {strides = array<i32>} : memref<8x8xf32, #tpu.memory_space<vmem>>, vector<8x8xf32>,
    return
  }
  func.func @transform_0(%arg0: i32, %arg1: i32) -> (i32, i32) {
    %c0_i32 = arith.constant 0 : i32
    return %arg0, %arg1 : i32, i32
  }
  func.func @transform_1(%arg0: i32, %arg1: i32) -> (i32, i32) {
    %c0_i32 = arith.constant 0 : i32
    return %arg0, %arg1 : i32, i32
  }
  func.func @transform_2(%arg0: i32, %arg1: i32) -> (i32, i32) {
    %c0_i32 = arith.constant 0 : i32
    return %arg0, %arg1 : i32, i32
  }
  func.func @transform_3(%arg0: i32, %arg1: i32) -> (i32, i32) {
    %c0_i32 = arith.constant 0 : i32
    return %arg0, %arg1 : i32, i32
  }
}

</mosaic_0001>

<bundles_post_ra>
// kernel: tpu_custom_call.1
= control target key start
LH: loop header
LB: loop body
LE: loop exit
PB: predicated region body
PF: predicated region fallthrough
CT: control target
= control target key end

     0   :  { %9 = vsyncpa [#allocation3], 0  ;;  %s230_s0 = inlined_call_operand.hbm [shape: f32[8,8], index: 0, kind: input, shape index: {}]   ;;  %s231_s1 = inlined_call_operand.hbm [shape: f32[8,8], index: 1, kind: input, shape index: {}]   ;;  %s232_s2 = inlined_call_operand.hbm [shape: f32[8,8], index: 2, kind: output, shape index: {0}]   ;;  %s233_s3 = inlined_call_operand.hbm [shape: f32[8,8], index: 3, kind: output, shape index: {1}]  }
   0x1   :  { %10 = vsyncpa [#allocation6], 0 }
   0x2   :  { %11 = vsyncpa [#allocation4], 0 }
   0x3   :  { %12 = vsyncpa [#allocation9], 0  ;;  %s18_s14 = sshll.u32 %s230_s0, 4  ;;  %s194_s15 = smov [#allocation2]   ;;  %s19_s14 = int_to_ptr.hbm [resolvable:$true] %s18_s14 }
   0x4   :  { %s20_s16 = sshll.u32 %s194_s15, 4  ;;  %s29_s19 = sshll.u32 %s231_s1, 4  ;;  %s21_s16 = int_to_ptr.vmem [resolvable:$true] %s20_s16  ;;  %s30_s19 = int_to_ptr.hbm [resolvable:$true] %s29_s19 }
   0x5   :  { %23 = dma.hbm_to_vmem [thread:$0]  %s19_s14, 128, %s21_s16, [#allocation3]  }
   0x6   :  { %s195_s20 = smov [#allocation5]  }
   0x7   :  { %s31_s21 = sshll.u32 %s195_s20, 4  ;;  %s32_s21 = int_to_ptr.vmem [resolvable:$true] %s31_s21 }
   0x8   :  { %34 = dma.hbm_to_vmem [thread:$0]  %s30_s19, 128, %s32_s21, [#allocation6]  }
   0x9   :  { %186 = dma.done.wait [#allocation3], 128  }
   0xa   :  { %187 = vsyncadd [#allocation3], 4294967168 }
   0xb   :  { %188 = dma.done.wait [#allocation6], 128  }
   0xc   :  { %189 = vsyncadd [#allocation6], 4294967168  ;;  %v43_v0 = vld [vmem:[#allocation2] sm:$0xff]  ;;  %v44_v1 = vld [vmem:[#allocation5] sm:$0xff]  ;;  %s196_s0 = smov [#allocation7]   ;;  %s59_s25 = sshll.u32 %s232_s2, 4  ;;  %s60_s25 = int_to_ptr.hbm [resolvable:$true] %s59_s25 }
   0xd   :  { %s57_s22 = sshll.u32 %s196_s0, 4  ;;  %v45_v2 = vadd.f32 %v44_v1, %v43_v0  ;;  %v49_v3 = vsub.f32 %v43_v0, %v44_v1  ;;  %s197_s1 = smov [#allocation8]   ;;  %vm47_vm0 = vcmask 64512   ;;  %s58_s22 = int_to_ptr.vmem [resolvable:$true] %s57_s22 }
   0xe   :  { %s68_s26 = sshll.u32 %s197_s1, 4  ;;  %s70_s29 = sshll.u32 %s233_s3, 4  ;;  %s69_s26 = int_to_ptr.vmem [resolvable:$true] %s68_s26  ;;  %s71_s29 = int_to_ptr.hbm [resolvable:$true] %s70_s29 }
   0xf   :  { %v46_v4 = vmul.f32 0.70710677, %v45_v2  ;;  %v50_v5 = vmul.f32 0.70710677, %v49_v3 }
  0x11   :  { %48 = vst.msk [vmem:[#allocation7] sm:$0xff] %vm47_vm0, %v46_v4 }
  0x12   :  { %51 = vst.msk [vmem:[#allocation8] sm:$0xff] %vm47_vm0, %v50_v5  ;;  %62 = dma.vmem_to_hbm [thread:$0]  %s58_s22, 128, %s60_s25, [#allocation4]  }
  0x13   :  { %73 = dma.vmem_to_hbm [thread:$0]  %s69_s26, 128, %s71_s29, [#allocation9]  }
  0x14   :  { %190 = dma.done.wait [#allocation4], 128  }
  0x15   :  { %191 = vsyncadd [#allocation4], 4294967168 }
  0x16   :  { %192 = dma.done.wait [#allocation9], 128  }
  0x17   :  { %193 = vsyncadd [#allocation9], 4294967168 }
  0x18   :  { %82 = vsyncpa [#allocation3], 1 }
  0x19   :  { %83 = vsyncpa [#allocation6], 1 }
  0x1a   :  { %84 = vsyncpa [#allocation4], 1 }
  0x1b   :  { %85 = vsyncpa [#allocation9], 1 }

</bundles_post_ra>
